<compile_context>
chip_gen: v7x
topology: tpu7x:2x2x1
jax: 0.10.0
libtpu: 0.0.40
codegen_flags: <defaults>
</compile_context>

<pallas_src>
import jax
import jax.numpy as jnp
from jax.experimental import pallas as pl
from jax.experimental.pallas import tpu as pltpu

LANE = 128       # vreg lane width
SUBLANE = 8      # f32 sublane count
TB_ALIGN = 16    # batch-tile alignment: lcm of f32 (8) and bf16 (16) sublane tiles


def _round_up(n, m):
    return ((n + m - 1) // m) * m


def _cdiv(a, b):
    return (a + b - 1) // b


def answer_classifier_kernel(x_ref, w1_ref, b1_ref, w2_ref, b2_ref, o_ref):
    """One batch tile of the forward pass, fully VMEM-resident.

    x_ref:  [TB, in_dim]    (f32; cast to bf16 in-kernel)
    w1_ref: [in_dim, hid_p] (bf16)   b1_ref: [1, hid_p] (f32)
    w2_ref: [hid_p, out_p]  (bf16)   b2_ref: [1, out_p] (f32)
    o_ref:  [TB, out_p]     (bf16, lane-dense)
    """
    # fc1 + bias + ReLU: bf16 MXU matmul with f32 accumulation.
    x = x_ref[...].astype(jnp.bfloat16)
    h = jnp.dot(x, w1_ref[...], preferred_element_type=jnp.float32)
    h = jnp.maximum(h + b1_ref[...], 0.0)

    # Dropout: identity at inference time.

    # fc2 + bias.
    logits = jnp.dot(h.astype(w2_ref.dtype), w2_ref[...],
                     preferred_element_type=jnp.float32)
    logits = logits + b2_ref[...]

    # sigmoid(z) = 0.5 * tanh(0.5 * z) + 0.5  -- single EUP transcendental per element.
    o_ref[...] = (0.5 * jnp.tanh(0.5 * logits) + 0.5).astype(o_ref.dtype)


def prepare_params(w1, b1, w2, b2):
    """One-time (model-load) weight prep: lane-dense zero padding + bf16 cast.

    w1: [in_dim, hid_dim], b1: [hid_dim] (or [1, hid_dim])
    w2: [hid_dim, out_dim], b2: [out_dim] (or [1, out_dim])
    Zero padding keeps the math identical on the real [:, :out_dim] slice.
    """
    in_dim, hid_dim = w1.shape
    out_dim = w2.shape[1]
    hid_p = _round_up(hid_dim, LANE)
    out_p = _round_up(out_dim, LANE)

    w1p = jnp.zeros((in_dim, hid_p), jnp.bfloat16).at[:, :hid_dim].set(
        w1.astype(jnp.bfloat16))
    b1p = jnp.zeros((1, hid_p), jnp.float32).at[:, :hid_dim].set(
        jnp.reshape(b1, (1, -1)).astype(jnp.float32))
    w2p = jnp.zeros((hid_p, out_p), jnp.bfloat16).at[:hid_dim, :out_dim].set(
        w2.astype(jnp.bfloat16))
    b2p = jnp.zeros((1, out_p), jnp.float32).at[:, :out_dim].set(
        jnp.reshape(b2, (1, -1)).astype(jnp.float32))
    return {"w1": w1p, "b1": b1p, "w2": w2p, "b2": b2p, "out_dim": out_dim}


def _physical_vmem_bytes():
    try:
        return int(pltpu.get_tpu_info().vmem_capacity_bytes)
    except Exception:
        return 64 << 20          # conservative: v7x per-TC VMEM


def _pick_batch_tile(B, in_dim, out_p, max_batch_block, stream_budget_bytes):
    # Streamed per-row VMEM bytes: f32 x tile in + bf16 out tile, double-buffered.
    per_row = in_dim * 4 + out_p * 2
    tb_cap = stream_budget_bytes // (2 * per_row)
    tb_cap = max(TB_ALIGN, min(max_batch_block, (tb_cap // TB_ALIGN) * TB_ALIGN))
    # >= 2 grid steps when B allows it (so v7x can shard the "parallel" batch axis
    # across its 2 TensorCores), and a balanced tile count so the last tile carries
    # minimal padding (B=300 -> tb=160, b_p=320 instead of tb=256, b_p=512).
    n_tiles = max(_cdiv(B, tb_cap), 2 if B > TB_ALIGN else 1)
    tb = _round_up(_cdiv(B, n_tiles), TB_ALIGN)
    n_tiles = _cdiv(B, tb)
    return tb, n_tiles


def answer_classifier(x, params, *, max_batch_block=1024,
                      stream_vmem_budget=24 << 20):
    """x: [B, in_dim] f32.  params: output of prepare_params() (call once at load)."""
    w1p, b1p, w2p, b2p = params["w1"], params["b1"], params["w2"], params["b2"]
    out_dim = params["out_dim"]
    B, in_dim = x.shape
    assert w1p.shape[0] == in_dim
    hid_p = w1p.shape[1]
    out_p = w2p.shape[1]

    tb, n_tiles = _pick_batch_tile(B, in_dim, out_p, max_batch_block,
                                   stream_vmem_budget)
    b_p = n_tiles * tb

    # Only the batch dim is padded (f32, and only when needed); no feature-dim pad
    # or dtype cast of x in the wrapper.
    xp = x if b_p == B else jnp.pad(x, ((0, b_p - B), (0, 0)))

    # VMEM footprint: single-buffered resident weights + double-buffered streamed tiles.
    weight_bytes = (w1p.size + w2p.size) * 2 + (b1p.size + b2p.size) * 4
    stream_bytes = 2 * (tb * in_dim * 4 + tb * out_p * 2)
    footprint = weight_bytes + stream_bytes
    vmem_cap = min(int(_physical_vmem_bytes() * 0.75), 100 << 20)
    vmem_limit = min(max(footprint + footprint // 4 + (4 << 20), 16 << 20), vmem_cap)

    flops = 2 * b_p * (in_dim * hid_p + hid_p * out_p)
    bytes_accessed = xp.size * 4 + weight_bytes + b_p * out_p * 2
    cost = pl.CostEstimate(flops=flops, transcendentals=b_p * out_p,
                           bytes_accessed=bytes_accessed)

    def build(single_buffer_weights):
        resident = ({"pipeline_mode": pl.Buffered(1)}
                    if single_buffer_weights else {})
        return pl.pallas_call(
            answer_classifier_kernel,
            out_shape=jax.ShapeDtypeStruct((b_p, out_p), jnp.bfloat16),
            grid_spec=pltpu.PrefetchScalarGridSpec(
                num_scalar_prefetch=0,
                grid=(n_tiles,),
                in_specs=[
                    pl.BlockSpec((tb, in_dim), lambda i: (i, 0)),                 # x: streamed
                    pl.BlockSpec((in_dim, hid_p), lambda i: (0, 0), **resident),  # w1: resident
                    pl.BlockSpec((1, hid_p), lambda i: (0, 0), **resident),       # b1: resident
                    pl.BlockSpec((hid_p, out_p), lambda i: (0, 0), **resident),   # w2: resident
                    pl.BlockSpec((1, out_p), lambda i: (0, 0), **resident),       # b2: resident
                ],
                out_specs=pl.BlockSpec((tb, out_p), lambda i: (i, 0)),
            ),
            compiler_params=pltpu.CompilerParams(
                dimension_semantics=("parallel",),    # megacore-shardable batch axis
                vmem_limit_bytes=int(vmem_limit),
            ),
            cost_estimate=cost,
        )

    try:
        out_padded = build(True)(xp, w1p, b1p, w2p, b2p)
    except Exception:
        # JAX version without single-buffer pipeline_mode support: fall back to the
        # default (double-buffered) resident-weight specs — correctness unchanged.
        out_padded = build(False)(xp, w1p, b1p, w2p, b2p)

    # Strip batch + lane padding and restore f32 outside the kernel.
    return out_padded[:B, :out_dim].astype(jnp.float32)


if __name__ == "__main__":
    in_dim, hid_dim, out_dim = 32, 64, 16
    batch = 8

    key = jax.random.PRNGKey(0)
    kx, k1, k2, k3, k4 = jax.random.split(key, 5)
    x = jax.random.normal(kx, (batch, in_dim), jnp.float32)

    # PyTorch-style Linear init (uniform +-1/sqrt(fan_in)); weights stored [in, out].
    bound1 = 1.0 / jnp.sqrt(float(in_dim))
    bound2 = 1.0 / jnp.sqrt(float(hid_dim))
    w1 = jax.random.uniform(k1, (in_dim, hid_dim), jnp.float32, -bound1, bound1)
    b1 = jax.random.uniform(k2, (hid_dim,), jnp.float32, -bound1, bound1)
    w2 = jax.random.uniform(k3, (hid_dim, out_dim), jnp.float32, -bound2, bound2)
    b2 = jax.random.uniform(k4, (out_dim,), jnp.float32, -bound2, bound2)

    params = prepare_params(w1, b1, w2, b2)   # one-time model-load prep
    out = answer_classifier(x, params)
    out = jax.block_until_ready(out)

    # Pure-JAX reference with the same bf16 matmul inputs / f32 accumulation as the kernel.
    xb, w1b, w2b = (a.astype(jnp.bfloat16) for a in (x, w1, w2))
    h_ref = jnp.maximum(
        jnp.dot(xb, w1b, preferred_element_type=jnp.float32) + b1[None, :], 0.0)
    logits_ref = jnp.dot(h_ref.astype(jnp.bfloat16), w2b,
                         preferred_element_type=jnp.float32) + b2[None, :]
    ref = jax.nn.sigmoid(logits_ref)

    assert out.shape == (batch, out_dim)
    # Tolerance covers the bf16 output slab + EUP tanh-based sigmoid epilogue.
    err = float(jnp.max(jnp.abs(out - ref)))
    assert jnp.allclose(out, ref, atol=1e-2, rtol=1e-2), err

    print("KERNEL_OK")
</pallas_src>

<mosaic_0001>
module attributes {stable_mosaic.version = 11 : i64} {
  func.func @answer_classifier_kernel(%arg0: i32, %arg1: memref<16x32xf32, #tpu.memory_space<vmem>>, %arg2: memref<32x128xbf16, #tpu.memory_space<vmem>>, %arg3: memref<1x128xf32, #tpu.memory_space<vmem>>, %arg4: memref<128x128xbf16, #tpu.memory_space<vmem>>, %arg5: memref<1x128xf32, #tpu.memory_space<vmem>>, %arg6: memref<16x128xbf16, #tpu.memory_space<vmem>>) attributes {dimension_semantics = [#tpu.dimension_semantics<parallel>], iteration_bounds = array<i64: 1>, scalar_prefetch = 0 : i64, scratch_operands = 0 : i64, tpu.core_type = #tpu.core_type<tc>, window_params = [{transform_indices = @transform_0, window_bounds = array<i64: 16, 32>}, {pipeline_mode = #tpu.pipeline_mode<synchronous>, transform_indices = @transform_1, window_bounds = array<i64: 32, 128>}, {pipeline_mode = #tpu.pipeline_mode<synchronous>, transform_indices = @transform_2, window_bounds = array<i64: 1, 128>}, {pipeline_mode = #tpu.pipeline_mode<synchronous>, transform_indices = @transform_3, window_bounds = array<i64: 128, 128>}, {pipeline_mode = #tpu.pipeline_mode<synchronous>, transform_indices = @transform_4, window_bounds = array<i64: 1, 128>}, {transform_indices = @transform_5, window_bounds = array<i64: 16, 128>}]} {
    %c0 = arith.constant 0 : index
    %c0_0 = arith.constant 0 : index
    %0 = vector.load %arg1[%c0, %c0_0] : memref<16x32xf32, #tpu.memory_space<vmem>>, vector<16x32xf32>
    %1 = arith.truncf %0 : vector<16x32xf32> to vector<16x32xbf16>
    %c0_1 = arith.constant 0 : index
    %c0_2 = arith.constant 0 : index
    %2 = vector.load %arg2[%c0_1, %c0_2] : memref<32x128xbf16, #tpu.memory_space<vmem>>, vector<32x128xbf16>
    %cst = arith.constant dense<0.000000e+00> : vector<16x128xf32>
    %3 = tpu.matmul %1, %2, %cst {dimension_numbers = #tpu.dot_dimension_numbers<[1], [0], [0], [1], [0, 0, 1, 1], [], []>} : vector<16x32xbf16>, vector<32x128xbf16>, vector<16x128xf32> -> vector<16x128xf32>
    %c0_3 = arith.constant 0 : index
    %c0_4 = arith.constant 0 : index
    %4 = vector.load %arg3[%c0_3, %c0_4] : memref<1x128xf32, #tpu.memory_space<vmem>>, vector<1x128xf32>
    %5 = vector.broadcast %4 : vector<1x128xf32> to vector<16x128xf32>
    %6 = arith.addf %3, %5 : vector<16x128xf32>
    %cst_5 = arith.constant 0.000000e+00 : f32
    %7 = vector.broadcast %cst_5 : f32 to vector<16x128xf32>
    %8 = arith.maximumf %6, %7 : vector<16x128xf32>
    %9 = arith.truncf %8 : vector<16x128xf32> to vector<16x128xbf16>
    %c0_6 = arith.constant 0 : index
    %c0_7 = arith.constant 0 : index
    %10 = vector.load %arg4[%c0_6, %c0_7] : memref<128x128xbf16, #tpu.memory_space<vmem>>, vector<128x128xbf16>
    %cst_8 = arith.constant dense<0.000000e+00> : vector<16x128xf32>
    %11 = tpu.matmul %9, %10, %cst_8 {dimension_numbers = #tpu.dot_dimension_numbers<[1], [0], [0], [1], [0, 0, 1, 1], [], []>} : vector<16x128xbf16>, vector<128x128xbf16>, vector<16x128xf32> -> vector<16x128xf32>
    %c0_9 = arith.constant 0 : index
    %c0_10 = arith.constant 0 : index
    %12 = vector.load %arg5[%c0_9, %c0_10] : memref<1x128xf32, #tpu.memory_space<vmem>>, vector<1x128xf32>
    %13 = vector.broadcast %12 : vector<1x128xf32> to vector<16x128xf32>
    %14 = arith.addf %11, %13 : vector<16x128xf32>
    %cst_11 = arith.constant 5.000000e-01 : f32
    %15 = vector.broadcast %cst_11 : f32 to vector<16x128xf32>
    %16 = arith.mulf %15, %14 : vector<16x128xf32>
    %17 = math.tanh %16 : vector<16x128xf32>
    %cst_12 = arith.constant 5.000000e-01 : f32
    %18 = vector.broadcast %cst_12 : f32 to vector<16x128xf32>
    %19 = arith.mulf %18, %17 : vector<16x128xf32>
    %cst_13 = arith.constant 5.000000e-01 : f32
    %20 = vector.broadcast %cst_13 : f32 to vector<16x128xf32>
    %21 = arith.addf %19, %20 : vector<16x128xf32>
    %22 = arith.truncf %21 : vector<16x128xf32> to vector<16x128xbf16>
    %c0_14 = arith.constant 0 : index
    %c0_15 = arith.constant 0 : index
    %23 = vector.load %arg6[%c0_14, %c0_15] : memref<16x128xbf16, #tpu.memory_space<vmem>>, vector<16x128xbf16>
    tpu.vector_store %arg6[%c0_14, %c0_15], %22 {strides = array<i32>} : memref<16x128xbf16, #tpu.memory_space<vmem>>, vector<16x128xbf16>,
    return
  }
  func.func @transform_0(%arg0: i32) -> (i32, i32) {
    %c0_i32 = arith.constant 0 : i32
    %c0_i32_0 = arith.constant 0 : i32
    return %arg0, %c0_i32 : i32, i32
  }
  func.func @transform_1(%arg0: i32) -> (i32, i32) {
    %c0_i32 = arith.constant 0 : i32
    %c0_i32_0 = arith.constant 0 : i32
    %c0_i32_1 = arith.constant 0 : i32
    return %c0_i32, %c0_i32_0 : i32, i32
  }
  func.func @transform_2(%arg0: i32) -> (i32, i32) {
    %c0_i32 = arith.constant 0 : i32
    %c0_i32_0 = arith.constant 0 : i32
    %c0_i32_1 = arith.constant 0 : i32
    return %c0_i32, %c0_i32_0 : i32, i32
  }
  func.func @transform_3(%arg0: i32) -> (i32, i32) {
    %c0_i32 = arith.constant 0 : i32
    %c0_i32_0 = arith.constant 0 : i32
    %c0_i32_1 = arith.constant 0 : i32
    return %c0_i32, %c0_i32_0 : i32, i32
  }
  func.func @transform_4(%arg0: i32) -> (i32, i32) {
    %c0_i32 = arith.constant 0 : i32
    %c0_i32_0 = arith.constant 0 : i32
    %c0_i32_1 = arith.constant 0 : i32
    return %c0_i32, %c0_i32_0 : i32, i32
  }
  func.func @transform_5(%arg0: i32) -> (i32, i32) {
    %c0_i32 = arith.constant 0 : i32
    %c0_i32_0 = arith.constant 0 : i32
    return %arg0, %c0_i32 : i32, i32
  }
}

module attributes {stable_mosaic.version = 11 : i64} {
  func.func @answer_classifier_kernel(%arg0: i32, %arg1: memref<16x32xf32, #tpu.memory_space<vmem>>, %arg2: memref<32x128xbf16, #tpu.memory_space<vmem>>, %arg3: memref<1x128xf32, #tpu.memory_space<vmem>>, %arg4: memref<128x128xbf16, #tpu.memory_space<vmem>>, %arg5: memref<1x128xf32, #tpu.memory_space<vmem>>, %arg6: memref<16x128xbf16, #tpu.memory_space<vmem>>) attributes {dimension_semantics = [#tpu.dimension_semantics<parallel>], iteration_bounds = array<i64: 1>, scalar_prefetch = 0 : i64, scratch_operands = 0 : i64, tpu.core_type = #tpu.core_type<tc>, window_params = [{transform_indices = @transform_0, window_bounds = array<i64: 16, 32>}, {pipeline_mode = #tpu.pipeline_mode<synchronous>, transform_indices = @transform_1, window_bounds = array<i64: 32, 128>}, {pipeline_mode = #tpu.pipeline_mode<synchronous>, transform_indices = @transform_2, window_bounds = array<i64: 1, 128>}, {pipeline_mode = #tpu.pipeline_mode<synchronous>, transform_indices = @transform_3, window_bounds = array<i64: 128, 128>}, {pipeline_mode = #tpu.pipeline_mode<synchronous>, transform_indices = @transform_4, window_bounds = array<i64: 1, 128>}, {transform_indices = @transform_5, window_bounds = array<i64: 16, 128>}]} {
    %c0 = arith.constant 0 : index
    %c0_0 = arith.constant 0 : index
    %0 = vector.load %arg1[%c0, %c0_0] : memref<16x32xf32, #tpu.memory_space<vmem>>, vector<16x32xf32>
    %1 = arith.truncf %0 : vector<16x32xf32> to vector<16x32xbf16>
    %c0_1 = arith.constant 0 : index
    %c0_2 = arith.constant 0 : index
    %2 = vector.load %arg2[%c0_1, %c0_2] : memref<32x128xbf16, #tpu.memory_space<vmem>>, vector<32x128xbf16>
    %cst = arith.constant dense<0.000000e+00> : vector<16x128xf32>
    %3 = tpu.matmul %1, %2, %cst {dimension_numbers = #tpu.dot_dimension_numbers<[1], [0], [0], [1], [0, 0, 1, 1], [], []>} : vector<16x32xbf16>, vector<32x128xbf16>, vector<16x128xf32> -> vector<16x128xf32>
    %c0_3 = arith.constant 0 : index
    %c0_4 = arith.constant 0 : index
    %4 = vector.load %arg3[%c0_3, %c0_4] : memref<1x128xf32, #tpu.memory_space<vmem>>, vector<1x128xf32>
    %5 = vector.broadcast %4 : vector<1x128xf32> to vector<16x128xf32>
    %6 = arith.addf %3, %5 : vector<16x128xf32>
    %cst_5 = arith.constant 0.000000e+00 : f32
    %7 = vector.broadcast %cst_5 : f32 to vector<16x128xf32>
    %8 = arith.maximumf %6, %7 : vector<16x128xf32>
    %9 = arith.truncf %8 : vector<16x128xf32> to vector<16x128xbf16>
    %c0_6 = arith.constant 0 : index
    %c0_7 = arith.constant 0 : index
    %10 = vector.load %arg4[%c0_6, %c0_7] : memref<128x128xbf16, #tpu.memory_space<vmem>>, vector<128x128xbf16>
    %cst_8 = arith.constant dense<0.000000e+00> : vector<16x128xf32>
    %11 = tpu.matmul %9, %10, %cst_8 {dimension_numbers = #tpu.dot_dimension_numbers<[1], [0], [0], [1], [0, 0, 1, 1], [], []>} : vector<16x128xbf16>, vector<128x128xbf16>, vector<16x128xf32> -> vector<16x128xf32>
    %c0_9 = arith.constant 0 : index
    %c0_10 = arith.constant 0 : index
    %12 = vector.load %arg5[%c0_9, %c0_10] : memref<1x128xf32, #tpu.memory_space<vmem>>, vector<1x128xf32>
    %13 = vector.broadcast %12 : vector<1x128xf32> to vector<16x128xf32>
    %14 = arith.addf %11, %13 : vector<16x128xf32>
    %cst_11 = arith.constant 5.000000e-01 : f32
    %15 = vector.broadcast %cst_11 : f32 to vector<16x128xf32>
    %16 = arith.mulf %15, %14 : vector<16x128xf32>
    %17 = math.tanh %16 : vector<16x128xf32>
    %cst_12 = arith.constant 5.000000e-01 : f32
    %18 = vector.broadcast %cst_12 : f32 to vector<16x128xf32>
    %19 = arith.mulf %18, %17 : vector<16x128xf32>
    %cst_13 = arith.constant 5.000000e-01 : f32
    %20 = vector.broadcast %cst_13 : f32 to vector<16x128xf32>
    %21 = arith.addf %19, %20 : vector<16x128xf32>
    %22 = arith.truncf %21 : vector<16x128xf32> to vector<16x128xbf16>
    %c0_14 = arith.constant 0 : index
    %c0_15 = arith.constant 0 : index
    %23 = vector.load %arg6[%c0_14, %c0_15] : memref<16x128xbf16, #tpu.memory_space<vmem>>, vector<16x128xbf16>
    tpu.vector_store %arg6[%c0_14, %c0_15], %22 {strides = array<i32>} : memref<16x128xbf16, #tpu.memory_space<vmem>>, vector<16x128xbf16>,
    return
  }
  func.func @transform_0(%arg0: i32) -> (i32, i32) {
    %c0_i32 = arith.constant 0 : i32
    %c0_i32_0 = arith.constant 0 : i32
    return %arg0, %c0_i32 : i32, i32
  }
  func.func @transform_1(%arg0: i32) -> (i32, i32) {
    %c0_i32 = arith.constant 0 : i32
    %c0_i32_0 = arith.constant 0 : i32
    %c0_i32_1 = arith.constant 0 : i32
    return %c0_i32, %c0_i32_0 : i32, i32
  }
  func.func @transform_2(%arg0: i32) -> (i32, i32) {
    %c0_i32 = arith.constant 0 : i32
    %c0_i32_0 = arith.constant 0 : i32
    %c0_i32_1 = arith.constant 0 : i32
    return %c0_i32, %c0_i32_0 : i32, i32
  }
  func.func @transform_3(%arg0: i32) -> (i32, i32) {
    %c0_i32 = arith.constant 0 : i32
    %c0_i32_0 = arith.constant 0 : i32
    %c0_i32_1 = arith.constant 0 : i32
    return %c0_i32, %c0_i32_0 : i32, i32
  }
  func.func @transform_4(%arg0: i32) -> (i32, i32) {
    %c0_i32 = arith.constant 0 : i32
    %c0_i32_0 = arith.constant 0 : i32
    %c0_i32_1 = arith.constant 0 : i32
    return %c0_i32, %c0_i32_0 : i32, i32
  }
  func.func @transform_5(%arg0: i32) -> (i32, i32) {
    %c0_i32 = arith.constant 0 : i32
    %c0_i32_0 = arith.constant 0 : i32
    return %arg0, %c0_i32 : i32, i32
  }
}

</mosaic_0001>

<bundles_post_ra>
// kernel: tpu_custom_call.1
= control target key start
LH: loop header
LB: loop body
LE: loop exit
PB: predicated region body
PF: predicated region fallthrough
CT: control target
= control target key end

     0   :  { %10 = vsyncpa [#allocation3], 0  ;;  %s568_s0 = inlined_call_operand.hbm [shape: f32[16,32], index: 0, kind: input, shape index: {}]   ;;  %s569_s1 = inlined_call_operand.hbm [shape: bf16[32,128], index: 1, kind: input, shape index: {}]   ;;  %s570_s2 = inlined_call_operand.vmem [shape: f32[1,128], index: 2, kind: input, shape index: {}]   ;;  %s571_s3 = inlined_call_operand.hbm [shape: bf16[128,128], index: 3, kind: input, shape index: {}]   ;;  %s572_s4 = inlined_call_operand.vmem [shape: f32[1,128], index: 4, kind: input, shape index: {}]   ;;  %s573_s5 = inlined_call_operand.hbm [shape: bf16[16,128], index: 5, kind: output, shape index: {}]  }
   0x1   :  { %11 = vsyncpa [#allocation6], 0 }
   0x2   :  { %12 = vsyncpa [#allocation4], 0  ;;  %s465_s18 = smov [#allocation5]   ;;  %s371_s22 = scalar_lea.hbm %s569_s1, 256 }
   0x3   :  { %s30_s19 = sshll.u32 %s465_s18, 4  ;;  %p372_p0 = scmp.ne.s32.totalorder %s569_s1, %s371_s22  ;;  %s31_s19 = int_to_ptr.vmem [resolvable:$true] %s30_s19 }
   0x4   :  { %p375_p1 = scmp.lt.u32.totalorder %s371_s22, %s569_s1 }
   0x6   :  { %p377_p2 = pnand %p375_p1, %p372_p0 }
   0x8   :  { %380 = shalt.err (!%p377_p2)
}
   0x9   :  { %s381_s27 = scalar_lea.vmem %s31_s19, 256  ;;  %p386_p4 = scmp.lt.s32.totalorder %s31_s19, %s31_s19 }
   0xa   :  { %p382_p3 = scmp.ne.s32.totalorder %s31_s19, %s381_s27  ;;  %p387_p5 = scmp.lt.s32.totalorder %s381_s27, %s381_s27 }
   0xc   :  { %p388_p6 = por %p387_p5, %p386_p4 }
   0xe   :  { %p389_p7 = pnand %p388_p6, %p382_p3 }
  0x10   :  { %392 = shalt.err (!%p389_p7)
}
  0x11   :  { %s466_s28 = smov 64   ;;  %s467_s29 = smov 4  }
  0x12   :  { %36 = dma.hbm_to_vmem [thread:$0]  %s569_s1, 256, %s31_s19, [#allocation6], %s466_s28, %s466_s28, %s467_s29  }
  0x13   :  { %s468_s7 = smov [#allocation2]   ;;  %s393_s11 = scalar_lea.hbm %s568_s0, 256 }
  0x14   :  { %s18_s8 = sshll.u32 %s468_s7, 4  ;;  %p394_p8 = scmp.ne.s32.totalorder %s568_s0, %s393_s11  ;;  %s19_s8 = int_to_ptr.vmem [resolvable:$true] %s18_s8 }
  0x15   :  { %p397_p9 = scmp.lt.u32.totalorder %s393_s11, %s568_s0 }
  0x17   :  { %p399_p10 = pnand %p397_p9, %p394_p8 }
  0x19   :  { %402 = shalt.err (!%p399_p10)
}
  0x1a   :  { %s403_s16 = scalar_lea.vmem %s19_s8, 256  ;;  %p408_p12 = scmp.lt.s32.totalorder %s19_s8, %s19_s8 }
  0x1b   :  { %p404_p11 = scmp.ne.s32.totalorder %s19_s8, %s403_s16  ;;  %p409_p13 = scmp.lt.s32.totalorder %s403_s16, %s403_s16 }
  0x1d   :  { %p410_p0 = por %p409_p13, %p408_p12 }
  0x1f   :  { %p411_p1 = pnand %p410_p0, %p404_p11 }
  0x21   :  { %414 = shalt.err (!%p411_p1)
}
  0x22   :  { %s469_s1 = smov 128   ;;  %s470_s17 = smov 8  }
  0x23   :  { %24 = dma.hbm_to_vmem [thread:$0]  %s568_s0, 256, %s19_s8, [#allocation3], %s469_s1, %s469_s1, %s470_s17  }
  0x24   :  { %s471_s20 = smov [#allocation7]   ;;  %s415_s24 = scalar_lea.hbm %s571_s3, 1024 }
  0x25   :  { %s44_s21 = sshll.u32 %s471_s20, 4  ;;  %p416_p2 = scmp.ne.s32.totalorder %s571_s3, %s415_s24  ;;  %s45_s21 = int_to_ptr.vmem [resolvable:$true] %s44_s21 }
  0x26   :  { %p419_p3 = scmp.lt.u32.totalorder %s415_s24, %s571_s3 }
  0x28   :  { %p421_p4 = pnand %p419_p3, %p416_p2 }
  0x2a   :  { %424 = shalt.err (!%p421_p4)
}
  0x2b   :  { %s425_s6 = scalar_lea.vmem %s45_s21, 1024  ;;  %p430_p6 = scmp.lt.s32.totalorder %s45_s21, %s45_s21 }
  0x2c   :  { %p426_p5 = scmp.ne.s32.totalorder %s45_s21, %s425_s6  ;;  %p431_p7 = scmp.lt.s32.totalorder %s425_s6, %s425_s6 }
  0x2e   :  { %p432_p8 = por %p431_p7, %p430_p6 }
  0x30   :  { %p433_p9 = pnand %p432_p8, %p426_p5 }
  0x32   :  { %436 = shalt.err (!%p433_p9)
}
  0x33   :  { %50 = dma.hbm_to_vmem [thread:$0]  %s571_s3, 1024, %s45_s21, [#allocation6], %s466_s28, %s466_s28, %s467_s29  }
  0x34   :  { %459 = dma.done.wait [#allocation3], 256  }
  0x35   :  { %460 = vsyncadd [#allocation3], 4294967040 }
  0x36   :  { %461 = dma.done.wait [#allocation6], 1280  }
  0x37   :  { %462 = vsyncadd [#allocation6], 4294966016  ;;  %v472_v0 = vmov 0.0   ;;  %vm473_vm0 = vmmov 0   ;;  %v357_v1 = vld [vmem:[#allocation5] sm:$0xff]   ;;  %v358_v2 = vld [vmem:[#allocation5 + $0x8] sm:$0xff]  }
  0x38   :  { %319 = vmatprep.subr.bf16.mxu0 %v472_v0  ;;  %323 = vmatprep.mubr.msk.bf16.mxu0 %vm473_vm0, %v472_v0  ;;  %v63_v3 = vld [vmem:[#allocation2] sm:$0xff]  ;;  %v64_v4 = vld [vmem:[#allocation2 + $0x8] sm:$0xff]  ;;  %vm89_vm1 = vcmask 261120   ;;  %v361_v8 = vld [vmem:[#allocation7 + $0x10] sm:$0xff]  }
  0x39   :  { %327 = vmatprep.subr.bf16.mxu1 %v472_v0  ;;  %343 = vmatprep.mubr.msk.bf16.mxu1 %vm473_vm0, %v472_v0  ;;  %v359_v5 = vld [vmem:[#allocation7] sm:$0xff]   ;;  %v65_v6 = vpack.c.bf16 %v64_v4, %v63_v3  ;;  %v360_v7 = vld [vmem:[#allocation7 + $0x8] sm:$0xff]   ;;  %v362_v9 = vld [vmem:[#allocation7 + $0x18] sm:$0xff]  }
  0x3a   :  { %320 = vmatpush3.bf16.msra.mxu0 %v357_v1  ;;  %328 = vmatpush3.bf16.msra.mxu1 %v359_v5  ;;  %v363_v10 = vld [vmem:[#allocation7 + $0x20] sm:$0xff]   ;;  %v364_v11 = vld [vmem:[#allocation7 + $0x28] sm:$0xff]   ;;  %v365_v12 = vld [vmem:[#allocation7 + $0x30] sm:$0xff]  }
  0x3b   :  { %321 = vmatprep.subr.bf16.mxu0 %v472_v0  ;;  %329 = vmatprep.subr.bf16.mxu1 %v472_v0  ;;  %v366_v13 = vld [vmem:[#allocation7 + $0x38] sm:$0xff]   ;;  %v285_v14 = vld [vmem:[%s570_s2] ss:$0 sm:$0xff]  ;;  %s474_s2 = smov [#allocation8]  }
  0x3c   :  { %v289_v24 = vld [vmem:[%s572_s4] ss:$0 sm:$0xff]  ;;  %s272_s11 = sshll.u32 %s474_s2, 4  ;;  %s273_s11 = int_to_ptr.vmem [resolvable:$true] %s272_s11 }
  0x3d   :  { %s437_s4 = scalar_lea.vmem %s273_s11, 128  ;;  %p442_p11 = scmp.lt.s32.totalorder %s273_s11, %s273_s11 }
  0x3e   :  { %322 = vmatpush3.bf16.msra.mxu0 %v358_v2  ;;  %330 = vmatpush3.bf16.msra.mxu1 %v360_v7  ;;  %p438_p10 = scmp.ne.s32.totalorder %s273_s11, %s437_s4  ;;  %p443_p12 = scmp.lt.s32.totalorder %s437_s4, %s437_s4 }
  0x3f   :  { %331 = vmatprep.subr.bf16.mxu1 %v472_v0 }
  0x40   :  { %p444_p13 = por %p443_p12, %p442_p11 }
  0x41   :  { %324 = vmatmul.mubr.msk.bf16.vlgmr.msra.gmra.mrb[0].mxu0 %vm89_vm1, %v65_v6 }
  0x42   :  { %332 = vmatpush3.bf16.msra.mxu1 %v361_v8  ;;  %p445_p0 = pnand %p444_p13, %p438_p10 }
  0x43   :  { %333 = vmatprep.subr.bf16.mxu1 %v472_v0 }
  0x46   :  { %334 = vmatpush3.bf16.msra.mxu1 %v362_v9 }
  0x47   :  { %335 = vmatprep.subr.bf16.mxu1 %v472_v0 }
  0x4a   :  { %336 = vmatpush3.bf16.msra.mxu1 %v363_v10 }
  0x4b   :  { %337 = vmatprep.subr.bf16.mxu1 %v472_v0 }
  0x4e   :  { %338 = vmatpush3.bf16.msra.mxu1 %v364_v11 }
  0x4f   :  { %339 = vmatprep.subr.bf16.mxu1 %v472_v0 }
  0x52   :  { %340 = vmatpush3.bf16.msra.mxu1 %v365_v12 }
  0x53   :  { %341 = vmatprep.subr.bf16.mxu1 %v472_v0 }
  0x56   :  { %342 = vmatpush3.bf16.msra.mxu1 %v366_v13 }
 0x114   :  { %v127_v15 = vpop.f32.mrb[0].mxu0 }
 0x115   :  { %v128_v16 = vadd.f32 %v285_v14, %v127_v15  ;;  %v325_v17 = vpop.f32.mrb[1].mxu0 }
 0x116   :  { %v130_v18 = vpop.f32.mrb[2].mxu0 }
 0x117   :  { %v131_v19 = vadd.f32 %v285_v14, %v130_v18  ;;  %v326_v20 = vpop.f32.mrb[3].mxu0  ;;  %v134_v21 = vmax.f32 %v128_v16, 0.0 }
 0x119   :  { %v135_v22 = vmax.f32 %v131_v19, 0.0 }
 0x11b   :  { %v136_v23 = vpack.c.bf16 %v135_v22, %v134_v21 }
 0x11d   :  { %344 = vmatmul.mubr.bf16.vlgmr.msra.gmra.mrb[0].mxu1 %v136_v23 }
 0x1f0   :  { %v242_v25 = vpop.f32.mrb[0].mxu1 }
 0x1f1   :  { %v243_v26 = vadd.f32 %v289_v24, %v242_v25  ;;  %v345_v27 = vpop.f32.mrb[1].mxu1 }
 0x1f2   :  { %v245_v28 = vpop.f32.mrb[2].mxu1 }
 0x1f3   :  { %v249_v29 = vmul.f32 0.5, %v243_v26  ;;  %v246_v30 = vadd.f32 %v289_v24, %v245_v28  ;;  %v346_v31 = vpop.f32.mrb[3].mxu1 }
 0x1f5   :  { %367 = vtanh.f32 %v249_v29  ;;  %v250_v32 = vmul.f32 0.5, %v246_v30 }
 0x1f7   :  { %369 = vtanh.f32 %v250_v32 }
 0x1ff   :  { %v368_v33 = vpop.eup %367 }
 0x200   :  { %v253_v34 = vmul.f32 0.5, %v368_v33 }
 0x201   :  { %v370_v35 = vpop.eup %369 }
 0x202   :  { %v254_v36 = vmul.f32 0.5, %v370_v35  ;;  %v255_v37 = vadd.f32 0.5, %v253_v34 }
 0x204   :  { %v256_v38 = vadd.f32 0.5, %v254_v36 }
 0x206   :  { %v305_v39 = vpack.c.bf16 %v256_v38, %v255_v37 }
 0x208   :  { %306 = vst [vmem:[#allocation8] sm:$0xff] %v305_v39  }
 0x209   :  { %448 = shalt.err (!%p445_p0)
}
 0x20a   :  { %s449_s14 = scalar_lea.hbm %s573_s5, 128 }
 0x20b   :  { %p450_p1 = scmp.ne.s32.totalorder %s573_s5, %s449_s14  ;;  %p453_p2 = scmp.lt.u32.totalorder %s449_s14, %s573_s5 }
 0x20d   :  { %p455_p3 = pnand %p453_p2, %p450_p1 }
 0x20f   :  { %458 = shalt.err (!%p455_p3)
}
 0x210   :  { %278 = dma.vmem_to_hbm [thread:$0]  %s273_s11, 128, %s573_s5, [#allocation4], %s466_s28, %s466_s28, %s467_s29  }
 0x211   :  { %463 = dma.done.wait [#allocation4], 128  }
 0x212   :  { %464 = vsyncadd [#allocation4], 4294967168 }
 0x213   :  { %282 = vsyncpa [#allocation3], 1 }
 0x214   :  { %283 = vsyncpa [#allocation6], 1 }
 0x215   :  { %284 = vsyncpa [#allocation4], 1 }

// kernel: tpu_custom_call.1
= control target key start
LH: loop header
LB: loop body
LE: loop exit
PB: predicated region body
PF: predicated region fallthrough
CT: control target
= control target key end

     0   :  { %10 = vsyncpa [#allocation3], 0  ;;  %s568_s0 = inlined_call_operand.hbm [shape: f32[16,32], index: 0, kind: input, shape index: {}]   ;;  %s569_s1 = inlined_call_operand.hbm [shape: bf16[32,128], index: 1, kind: input, shape index: {}]   ;;  %s570_s2 = inlined_call_operand.vmem [shape: f32[1,128], index: 2, kind: input, shape index: {}]   ;;  %s571_s3 = inlined_call_operand.hbm [shape: bf16[128,128], index: 3, kind: input, shape index: {}]   ;;  %s572_s4 = inlined_call_operand.vmem [shape: f32[1,128], index: 4, kind: input, shape index: {}]   ;;  %s573_s5 = inlined_call_operand.hbm [shape: bf16[16,128], index: 5, kind: output, shape index: {}]  }
   0x1   :  { %11 = vsyncpa [#allocation6], 0 }
   0x2   :  { %12 = vsyncpa [#allocation4], 0  ;;  %s465_s18 = smov [#allocation5]   ;;  %s371_s22 = scalar_lea.hbm %s569_s1, 256 }
   0x3   :  { %s30_s19 = sshll.u32 %s465_s18, 4  ;;  %p372_p0 = scmp.ne.s32.totalorder %s569_s1, %s371_s22  ;;  %s31_s19 = int_to_ptr.vmem [resolvable:$true] %s30_s19 }
   0x4   :  { %p375_p1 = scmp.lt.u32.totalorder %s371_s22, %s569_s1 }
   0x6   :  { %p377_p2 = pnand %p375_p1, %p372_p0 }
   0x8   :  { %380 = shalt.err (!%p377_p2)
}
   0x9   :  { %s381_s27 = scalar_lea.vmem %s31_s19, 256  ;;  %p386_p4 = scmp.lt.s32.totalorder %s31_s19, %s31_s19 }
   0xa   :  { %p382_p3 = scmp.ne.s32.totalorder %s31_s19, %s381_s27  ;;  %p387_p5 = scmp.lt.s32.totalorder %s381_s27, %s381_s27 }
   0xc   :  { %p388_p6 = por %p387_p5, %p386_p4 }
   0xe   :  { %p389_p7 = pnand %p388_p6, %p382_p3 }
  0x10   :  { %392 = shalt.err (!%p389_p7)
}
  0x11   :  { %s466_s28 = smov 64   ;;  %s467_s29 = smov 4  }
  0x12   :  { %36 = dma.hbm_to_vmem [thread:$0]  %s569_s1, 256, %s31_s19, [#allocation6], %s466_s28, %s466_s28, %s467_s29  }
  0x13   :  { %s468_s7 = smov [#allocation2]   ;;  %s393_s11 = scalar_lea.hbm %s568_s0, 256 }
  0x14   :  { %s18_s8 = sshll.u32 %s468_s7, 4  ;;  %p394_p8 = scmp.ne.s32.totalorder %s568_s0, %s393_s11  ;;  %s19_s8 = int_to_ptr.vmem [resolvable:$true] %s18_s8 }
  0x15   :  { %p397_p9 = scmp.lt.u32.totalorder %s393_s11, %s568_s0 }
  0x17   :  { %p399_p10 = pnand %p397_p9, %p394_p8 }
  0x19   :  { %402 = shalt.err (!%p399_p10)
}
  0x1a   :  { %s403_s16 = scalar_lea.vmem %s19_s8, 256  ;;  %p408_p12 = scmp.lt.s32.totalorder %s19_s8, %s19_s8 }
  0x1b   :  { %p404_p11 = scmp.ne.s32.totalorder %s19_s8, %s403_s16  ;;  %p409_p13 = scmp.lt.s32.totalorder %s403_s16, %s403_s16 }
  0x1d   :  { %p410_p0 = por %p409_p13, %p408_p12 }
  0x1f   :  { %p411_p1 = pnand %p410_p0, %p404_p11 }
  0x21   :  { %414 = shalt.err (!%p411_p1)
}
  0x22   :  { %s469_s1 = smov 128   ;;  %s470_s17 = smov 8  }
  0x23   :  { %24 = dma.hbm_to_vmem [thread:$0]  %s568_s0, 256, %s19_s8, [#allocation3], %s469_s1, %s469_s1, %s470_s17  }
  0x24   :  { %s471_s20 = smov [#allocation7]   ;;  %s415_s24 = scalar_lea.hbm %s571_s3, 1024 }
  0x25   :  { %s44_s21 = sshll.u32 %s471_s20, 4  ;;  %p416_p2 = scmp.ne.s32.totalorder %s571_s3, %s415_s24  ;;  %s45_s21 = int_to_ptr.vmem [resolvable:$true] %s44_s21 }
  0x26   :  { %p419_p3 = scmp.lt.u32.totalorder %s415_s24, %s571_s3 }
  0x28   :  { %p421_p4 = pnand %p419_p3, %p416_p2 }
  0x2a   :  { %424 = shalt.err (!%p421_p4)
}
  0x2b   :  { %s425_s6 = scalar_lea.vmem %s45_s21, 1024  ;;  %p430_p6 = scmp.lt.s32.totalorder %s45_s21, %s45_s21 }
  0x2c   :  { %p426_p5 = scmp.ne.s32.totalorder %s45_s21, %s425_s6  ;;  %p431_p7 = scmp.lt.s32.totalorder %s425_s6, %s425_s6 }
  0x2e   :  { %p432_p8 = por %p431_p7, %p430_p6 }
  0x30   :  { %p433_p9 = pnand %p432_p8, %p426_p5 }
  0x32   :  { %436 = shalt.err (!%p433_p9)
}
  0x33   :  { %50 = dma.hbm_to_vmem [thread:$0]  %s571_s3, 1024, %s45_s21, [#allocation6], %s466_s28, %s466_s28, %s467_s29  }
  0x34   :  { %459 = dma.done.wait [#allocation3], 256  }
  0x35   :  { %460 = vsyncadd [#allocation3], 4294967040 }
  0x36   :  { %461 = dma.done.wait [#allocation6], 1280  }
  0x37   :  { %462 = vsyncadd [#allocation6], 4294966016  ;;  %v472_v0 = vmov 0.0   ;;  %vm473_vm0 = vmmov 0   ;;  %v357_v1 = vld [vmem:[#allocation5] sm:$0xff]   ;;  %v358_v2 = vld [vmem:[#allocation5 + $0x8] sm:$0xff]  }
  0x38   :  { %319 = vmatprep.subr.bf16.mxu0 %v472_v0  ;;  %323 = vmatprep.mubr.msk.bf16.mxu0 %vm473_vm0, %v472_v0  ;;  %v63_v3 = vld [vmem:[#allocation2] sm:$0xff]  ;;  %v64_v4 = vld [vmem:[#allocation2 + $0x8] sm:$0xff]  ;;  %vm89_vm1 = vcmask 261120   ;;  %v361_v8 = vld [vmem:[#allocation7 + $0x10] sm:$0xff]  }
  0x39   :  { %327 = vmatprep.subr.bf16.mxu1 %v472_v0  ;;  %343 = vmatprep.mubr.msk.bf16.mxu1 %vm473_vm0, %v472_v0  ;;  %v359_v5 = vld [vmem:[#allocation7] sm:$0xff]   ;;  %v65_v6 = vpack.c.bf16 %v64_v4, %v63_v3  ;;  %v360_v7 = vld [vmem:[#allocation7 + $0x8] sm:$0xff]   ;;  %v362_v9 = vld [vmem:[#allocation7 + $0x18] sm:$0xff]  }
  0x3a   :  { %320 = vmatpush3.bf16.msra.mxu0 %v357_v1  ;;  %328 = vmatpush3.bf16.msra.mxu1 %v359_v5  ;;  %v363_v10 = vld [vmem:[#allocation7 + $0x20] sm:$0xff]   ;;  %v364_v11 = vld [vmem:[#allocation7 + $0x28] sm:$0xff]   ;;  %v365_v12 = vld [vmem:[#allocation7 + $0x30] sm:$0xff]  }
  0x3b   :  { %321 = vmatprep.subr.bf16.mxu0 %v472_v0  ;;  %329 = vmatprep.subr.bf16.mxu1 %v472_v0  ;;  %v366_v13 = vld [vmem:[#allocation7 + $0x38] sm:$0xff]   ;;  %v285_v14 = vld [vmem:[%s570_s2] ss:$0 sm:$0xff]  ;;  %s474_s2 = smov [#allocation8]  }
  0x3c   :  { %v289_v24 = vld [vmem:[%s572_s4] ss:$0 sm:$0xff]  ;;  %s272_s11 = sshll.u32 %s474_s2, 4  ;;  %s273_s11 = int_to_ptr.vmem [resolvable:$true] %s272_s11 }
  0x3d   :  { %s437_s4 = scalar_lea.vmem %s273_s11, 128  ;;  %p442_p11 = scmp.lt.s32.totalorder %s273_s11, %s273_s11 }
  0x3e   :  { %322 = vmatpush3.bf16.msra.mxu0 %v358_v2  ;;  %330 = vmatpush3.bf16.msra.mxu1 %v360_v7  ;;  %p438_p10 = scmp.ne.s32.totalorder %s273_s11, %s437_s4  ;;  %p443_p12 = scmp.lt.s32.totalorder %s437_s4, %s437_s4 }
  0x3f   :  { %331 = vmatprep.subr.bf16.mxu1 %v472_v0 }
  0x40   :  { %p444_p13 = por %p443_p12, %p442_p11 }
  0x41   :  { %324 = vmatmul.mubr.msk.bf16.vlgmr.msra.gmra.mrb[0].mxu0 %vm89_vm1, %v65_v6 }
  0x42   :  { %332 = vmatpush3.bf16.msra.mxu1 %v361_v8  ;;  %p445_p0 = pnand %p444_p13, %p438_p10 }
  0x43   :  { %333 = vmatprep.subr.bf16.mxu1 %v472_v0 }
  0x46   :  { %334 = vmatpush3.bf16.msra.mxu1 %v362_v9 }
  0x47   :  { %335 = vmatprep.subr.bf16.mxu1 %v472_v0 }
  0x4a   :  { %336 = vmatpush3.bf16.msra.mxu1 %v363_v10 }
  0x4b   :  { %337 = vmatprep.subr.bf16.mxu1 %v472_v0 }
  0x4e   :  { %338 = vmatpush3.bf16.msra.mxu1 %v364_v11 }
  0x4f   :  { %339 = vmatprep.subr.bf16.mxu1 %v472_v0 }
  0x52   :  { %340 = vmatpush3.bf16.msra.mxu1 %v365_v12 }
  0x53   :  { %341 = vmatprep.subr.bf16.mxu1 %v472_v0 }
  0x56   :  { %342 = vmatpush3.bf16.msra.mxu1 %v366_v13 }
 0x114   :  { %v127_v15 = vpop.f32.mrb[0].mxu0 }
 0x115   :  { %v128_v16 = vadd.f32 %v285_v14, %v127_v15  ;;  %v325_v17 = vpop.f32.mrb[1].mxu0 }
 0x116   :  { %v130_v18 = vpop.f32.mrb[2].mxu0 }
 0x117   :  { %v131_v19 = vadd.f32 %v285_v14, %v130_v18  ;;  %v326_v20 = vpop.f32.mrb[3].mxu0  ;;  %v134_v21 = vmax.f32 %v128_v16, 0.0 }
 0x119   :  { %v135_v22 = vmax.f32 %v131_v19, 0.0 }
 0x11b   :  { %v136_v23 = vpack.c.bf16 %v135_v22, %v134_v21 }
 0x11d   :  { %344 = vmatmul.mubr.bf16.vlgmr.msra.gmra.mrb[0].mxu1 %v136_v23 }
 0x1f0   :  { %v242_v25 = vpop.f32.mrb[0].mxu1 }
 0x1f1   :  { %v243_v26 = vadd.f32 %v289_v24, %v242_v25  ;;  %v345_v27 = vpop.f32.mrb[1].mxu1 }
 0x1f2   :  { %v245_v28 = vpop.f32.mrb[2].mxu1 }
 0x1f3   :  { %v249_v29 = vmul.f32 0.5, %v243_v26  ;;  %v246_v30 = vadd.f32 %v289_v24, %v245_v28  ;;  %v346_v31 = vpop.f32.mrb[3].mxu1 }
 0x1f5   :  { %367 = vtanh.f32 %v249_v29  ;;  %v250_v32 = vmul.f32 0.5, %v246_v30 }
 0x1f7   :  { %369 = vtanh.f32 %v250_v32 }
 0x1ff   :  { %v368_v33 = vpop.eup %367 }
 0x200   :  { %v253_v34 = vmul.f32 0.5, %v368_v33 }
 0x201   :  { %v370_v35 = vpop.eup %369 }
 0x202   :  { %v254_v36 = vmul.f32 0.5, %v370_v35  ;;  %v255_v37 = vadd.f32 0.5, %v253_v34 }
 0x204   :  { %v256_v38 = vadd.f32 0.5, %v254_v36 }
 0x206   :  { %v305_v39 = vpack.c.bf16 %v256_v38, %v255_v37 }
 0x208   :  { %306 = vst [vmem:[#allocation8] sm:$0xff] %v305_v39  }
 0x209   :  { %448 = shalt.err (!%p445_p0)
}
 0x20a   :  { %s449_s14 = scalar_lea.hbm %s573_s5, 128 }
 0x20b   :  { %p450_p1 = scmp.ne.s32.totalorder %s573_s5, %s449_s14  ;;  %p453_p2 = scmp.lt.u32.totalorder %s449_s14, %s573_s5 }
 0x20d   :  { %p455_p3 = pnand %p453_p2, %p450_p1 }
 0x20f   :  { %458 = shalt.err (!%p455_p3)
}
 0x210   :  { %278 = dma.vmem_to_hbm [thread:$0]  %s273_s11, 128, %s573_s5, [#allocation4], %s466_s28, %s466_s28, %s467_s29  }
 0x211   :  { %463 = dma.done.wait [#allocation4], 128  }
 0x212   :  { %464 = vsyncadd [#allocation4], 4294967168 }
 0x213   :  { %282 = vsyncpa [#allocation3], 1 }
 0x214   :  { %283 = vsyncpa [#allocation6], 1 }
 0x215   :  { %284 = vsyncpa [#allocation4], 1 }

</bundles_post_ra>
